<compile_context>
chip_gen: v7x
topology: tpu7x:2x2x1
jax: 0.10.0
libtpu: 0.0.40
codegen_flags: <defaults>
</compile_context>

<pallas_src>
import functools

import jax
import jax.numpy as jnp
from jax.experimental import pallas as pl
from jax.experimental.pallas import tpu as pltpu


# ---------------------------------------------------------------------------
# Kernel 1: hoisted input projection  gx = X @ W_ih^T + (b_ih + b_hh)
# ---------------------------------------------------------------------------
def _proj_kernel(x_ref, w_ref, b_ref, o_ref):
    o_ref[...] = (
        jnp.dot(x_ref[...], w_ref[...], preferred_element_type=jnp.float32)
        + b_ref[...]
    )


def _pick_tile(m, cap=512):
    """Largest tile <= cap that divides m and is a multiple of 8 (else full)."""
    if m <= cap:
        return m
    for t in range(cap, 7, -8):
        if m % t == 0 and t % 8 == 0:
            return t
    return m


def _input_projection(x_tnd, w_ih_t_bf16, bias_f32):
    """x_tnd: (T_pad, N, Din) f32.  Returns gx: (T_pad, N, 4H) f32."""
    T_pad, N, Din = x_tnd.shape
    G4 = w_ih_t_bf16.shape[-1]
    M = T_pad * N
    x2 = x_tnd.reshape(M, Din).astype(jnp.bfloat16)
    tm = _pick_tile(M)

    gx = pl.pallas_call(
        _proj_kernel,
        grid_spec=pltpu.PrefetchScalarGridSpec(
            num_scalar_prefetch=0,
            grid=(M // tm,),
            in_specs=[
                pl.BlockSpec((tm, Din), lambda i: (i, 0)),   # X slab (bf16)
                pl.BlockSpec((Din, G4), lambda i: (0, 0)),   # W_ih^T (bf16)
                pl.BlockSpec((1, G4), lambda i: (0, 0)),     # fused bias (f32)
            ],
            out_specs=pl.BlockSpec((tm, G4), lambda i: (i, 0)),
        ),
        out_shape=jax.ShapeDtypeStruct((M, G4), jnp.float32),
        compiler_params=pltpu.CompilerParams(
            dimension_semantics=("parallel",)),
    )(x2, w_ih_t_bf16, bias_f32)
    return gx.reshape(T_pad, N, G4)


# ---------------------------------------------------------------------------
# Kernel 2: recurrence.  Grid = (batch_block [parallel], time_chunk [arbitrary])
# ---------------------------------------------------------------------------
def _lstm_chunk_kernel(mask_ref, gx_ref, whh_ref, h0_ref, c0_ref,
                       y_ref, hn_ref, cn_ref,
                       h_scr, c_scr, *, hidden_size, chunk):
    H = hidden_size
    c_idx = pl.program_id(1)

    @pl.when(c_idx == 0)
    def _init():
        h_scr[...] = h0_ref[...]
        c_scr[...] = c0_ref[...]

    h = h_scr[...]              # (Nb, H) f32
    c = c_scr[...]              # (Nb, H) f32
    w = whh_ref[...]            # (H, 4H) bf16, resident

    # Fully unrolled chunk: static trip count -> straight-line code the
    # scheduler can overlap across MXU / EUP / VPU.
    for i in range(chunk):
        # gates: (Nb, 4H), gate order [i | f | g | o]; x-proj + bias were
        # precomputed, only the recurrent matmul remains on the serial path.
        gates = gx_ref[i] + jnp.dot(h.astype(jnp.bfloat16), w,
                                    preferred_element_type=jnp.float32)
        i_g = jax.nn.sigmoid(gates[:, 0 * H:1 * H])
        f_g = jax.nn.sigmoid(gates[:, 1 * H:2 * H])
        g_g = jnp.tanh(gates[:, 2 * H:3 * H])
        o_g = jax.nn.sigmoid(gates[:, 3 * H:4 * H])

        c_new = f_g * c + i_g * g_g
        h_new = o_g * jnp.tanh(c_new)

        m = mask_ref[i]                          # (Nb, 1), 1.0 = valid step
        h = h + m * (h_new - h)                  # freeze state past seq end
        c = c + m * (c_new - c)
        # pad_packed_sequence -> exact zeros at padded positions
        y_ref[i] = (m * h_new).astype(y_ref.dtype)

    h_scr[...] = h
    c_scr[...] = c

    @pl.when(c_idx == pl.num_programs(1) - 1)
    def _finalize():
        hn_ref[...] = h.astype(hn_ref.dtype)
        cn_ref[...] = c.astype(cn_ref.dtype)


def _run_layer(gx, mask, w_hh_t_bf16, h0, c0, *, Tc, Nb):
    """gx: (T_pad, N, 4H) f32.  Returns y (T_pad, N, H), h_n, c_n (N, H)."""
    T_pad, N, G4 = gx.shape
    H = h0.shape[-1]
    n_chunks = T_pad // Tc
    n_bblocks = N // Nb

    kernel = functools.partial(_lstm_chunk_kernel, hidden_size=H, chunk=Tc)

    grid_spec = pltpu.PrefetchScalarGridSpec(
        num_scalar_prefetch=0,
        grid=(n_bblocks, n_chunks),
        in_specs=[
            pl.BlockSpec((Tc, Nb, 1), lambda b, c: (c, b, 0)),    # valid mask
            pl.BlockSpec((Tc, Nb, G4), lambda b, c: (c, b, 0)),   # x-proj gates
            pl.BlockSpec((H, G4), lambda b, c: (0, 0)),           # W_hh^T bf16
            pl.BlockSpec((Nb, H), lambda b, c: (b, 0)),           # h0
            pl.BlockSpec((Nb, H), lambda b, c: (b, 0)),           # c0
        ],
        out_specs=[
            pl.BlockSpec((Tc, Nb, H), lambda b, c: (c, b, 0)),    # y chunk
            pl.BlockSpec((Nb, H), lambda b, c: (b, 0)),           # h_n
            pl.BlockSpec((Nb, H), lambda b, c: (b, 0)),           # c_n
        ],
        scratch_shapes=[
            pltpu.VMEM((Nb, H), jnp.float32),                     # h state
            pltpu.VMEM((Nb, H), jnp.float32),                     # c state
        ],
    )

    y, hn, cn = pl.pallas_call(
        kernel,
        grid_spec=grid_spec,
        out_shape=(
            jax.ShapeDtypeStruct((T_pad, N, H), jnp.float32),
            jax.ShapeDtypeStruct((N, H), jnp.float32),
            jax.ShapeDtypeStruct((N, H), jnp.float32),
        ),
        compiler_params=pltpu.CompilerParams(
            dimension_semantics=("parallel", "arbitrary")),
    )(mask, gx, w_hh_t_bf16, h0, c0)
    return y, hn, cn


# ---------------------------------------------------------------------------
# Wrapper mirroring LSTMNoEmbedding.forward
# ---------------------------------------------------------------------------
def lstm_no_embedding_forward(X, X_lengths, h0, params, chunk=8):
    """X: (N, T, input_size) f32 batch-first; X_lengths: list[int] (sorted desc);
    h0 = (h_0, c_0) each (n_layers, N, H); params: [(W_ih, W_hh, b_ih, b_hh)].
    Returns (output (N, max(X_lengths), H), (h_n, c_n))."""
    h_init, c_init = h0
    N, T, _ = X.shape
    n_layers = h_init.shape[0]

    # Only run the recurrence up to the longest real sequence.
    T_eff = int(max(X_lengths))
    Tc = min(chunk, T_eff)
    n_chunks = -(-T_eff // Tc)
    T_pad = n_chunks * Tc

    lengths = jnp.asarray(X_lengths, dtype=jnp.int32)                # (N,)
    t_iota = jnp.arange(T_pad, dtype=jnp.int32)[:, None]             # (T_pad, 1)
    mask = (t_iota < lengths[None, :]).astype(jnp.float32)[:, :, None]  # (T_pad,N,1)

    x = jnp.transpose(X, (1, 0, 2)).astype(jnp.float32)[:T_eff]      # (T_eff,N,D)
    if T_pad > T_eff:
        x = jnp.pad(x, ((0, T_pad - T_eff), (0, 0), (0, 0)))

    # Shard batch over 2 TensorCores (v7x) when it divides cleanly; else 1 block.
    Nb = N // 2 if (N % 16 == 0) else N

    layer_in = x
    hn_list, cn_list = [], []
    for layer in range(n_layers):
        W_ih, W_hh, b_ih, b_hh = params[layer]
        w_ih_t = jnp.transpose(W_ih).astype(jnp.bfloat16)            # (Din, 4H)
        w_hh_t = jnp.transpose(W_hh).astype(jnp.bfloat16)            # (H, 4H)
        bias = (b_ih + b_hh).astype(jnp.float32).reshape(1, -1)      # (1, 4H)

        gx = _input_projection(layer_in, w_ih_t, bias)               # hoisted GEMM
        y, hn, cn = _run_layer(gx, mask, w_hh_t,
                               h_init[layer].astype(jnp.float32),
                               c_init[layer].astype(jnp.float32),
                               Tc=Tc, Nb=Nb)
        layer_in = y
        hn_list.append(hn)
        cn_list.append(cn)

    out = jnp.transpose(layer_in[:T_eff], (1, 0, 2))                 # (N,T_eff,H)
    return out, (jnp.stack(hn_list, axis=0), jnp.stack(cn_list, axis=0))


def init_lstm_params(key, input_size, hidden_size, n_layers):
    """PyTorch-style init: U(-1/sqrt(H), 1/sqrt(H))."""
    params = []
    bound = 1.0 / float(jnp.sqrt(jnp.float32(hidden_size)))
    for layer in range(n_layers):
        d_in = input_size if layer == 0 else hidden_size
        key, k1, k2, k3, k4 = jax.random.split(key, 5)
        W_ih = jax.random.uniform(k1, (4 * hidden_size, d_in), jnp.float32,
                                  -bound, bound)
        W_hh = jax.random.uniform(k2, (4 * hidden_size, hidden_size),
                                  jnp.float32, -bound, bound)
        b_ih = jax.random.uniform(k3, (4 * hidden_size,), jnp.float32,
                                  -bound, bound)
        b_hh = jax.random.uniform(k4, (4 * hidden_size,), jnp.float32,
                                  -bound, bound)
        params.append((W_ih, W_hh, b_ih, b_hh))
    return params


if __name__ == "__main__":
    # Small shapes consistent with the module: N=4 sequences, T=8 steps,
    # input_size=16, hidden_size=32, n_layers=2.
    N, T, D, H, L = 4, 8, 16, 32, 2
    key = jax.random.PRNGKey(0)
    k_x, k_h, k_c, k_p = jax.random.split(key, 4)

    X = jax.random.normal(k_x, (N, T, D), jnp.float32)
    X_lengths = [8, 6, 5, 3]                               # sorted descending
    h_0 = jax.random.normal(k_h, (L, N, H), jnp.float32)   # init_hidden()[0]
    c_0 = jax.random.normal(k_c, (L, N, H), jnp.float32)   # init_hidden()[1]
    params = init_lstm_params(k_p, D, H, L)

    out, (h_n, c_n) = lstm_no_embedding_forward(X, X_lengths, (h_0, c_0), params)
    jax.block_until_ready((out, h_n, c_n))

    assert out.shape == (N, max(X_lengths), H)
    assert h_n.shape == (L, N, H) and c_n.shape == (L, N, H)
    # Padded positions must be exactly zero (pad_packed_sequence semantics).
    assert float(jnp.abs(out[3, 3:, :]).max()) == 0.0
    print("KERNEL_OK")
</pallas_src>

<mosaic_0001>
module attributes {stable_mosaic.version = 11 : i64} {
  func.func @_proj_kernel(%arg0: i32, %arg1: memref<32x16xbf16, #tpu.memory_space<vmem>>, %arg2: memref<16x128xbf16, #tpu.memory_space<vmem>>, %arg3: memref<1x128xf32, #tpu.memory_space<vmem>>, %arg4: memref<32x128xf32, #tpu.memory_space<vmem>>) attributes {dimension_semantics = [#tpu.dimension_semantics<parallel>], iteration_bounds = array<i64: 1>, scalar_prefetch = 0 : i64, scratch_operands = 0 : i64, tpu.core_type = #tpu.core_type<tc>, window_params = [{transform_indices = @transform_0, window_bounds = array<i64: 32, 16>}, {pipeline_mode = #tpu.pipeline_mode<synchronous>, transform_indices = @transform_1, window_bounds = array<i64: 16, 128>}, {pipeline_mode = #tpu.pipeline_mode<synchronous>, transform_indices = @transform_2, window_bounds = array<i64: 1, 128>}, {transform_indices = @transform_3, window_bounds = array<i64: 32, 128>}]} {
    %c0 = arith.constant 0 : index
    %c0_0 = arith.constant 0 : index
    %0 = vector.load %arg1[%c0, %c0_0] : memref<32x16xbf16, #tpu.memory_space<vmem>>, vector<32x16xbf16>
    %c0_1 = arith.constant 0 : index
    %c0_2 = arith.constant 0 : index
    %1 = vector.load %arg2[%c0_1, %c0_2] : memref<16x128xbf16, #tpu.memory_space<vmem>>, vector<16x128xbf16>
    %cst = arith.constant dense<0.000000e+00> : vector<32x128xf32>
    %2 = tpu.matmul %0, %1, %cst {dimension_numbers = #tpu.dot_dimension_numbers<[1], [0], [0], [1], [0, 0, 1, 1], [], []>} : vector<32x16xbf16>, vector<16x128xbf16>, vector<32x128xf32> -> vector<32x128xf32>
    %c0_3 = arith.constant 0 : index
    %c0_4 = arith.constant 0 : index
    %3 = vector.load %arg3[%c0_3, %c0_4] : memref<1x128xf32, #tpu.memory_space<vmem>>, vector<1x128xf32>
    %4 = vector.broadcast %3 : vector<1x128xf32> to vector<32x128xf32>
    %5 = arith.addf %2, %4 : vector<32x128xf32>
    %c0_5 = arith.constant 0 : index
    %c0_6 = arith.constant 0 : index
    %6 = vector.load %arg4[%c0_5, %c0_6] : memref<32x128xf32, #tpu.memory_space<vmem>>, vector<32x128xf32>
    tpu.vector_store %arg4[%c0_5, %c0_6], %5 {strides = array<i32>} : memref<32x128xf32, #tpu.memory_space<vmem>>, vector<32x128xf32>,
    return
  }
  func.func @transform_0(%arg0: i32) -> (i32, i32) {
    %c0_i32 = arith.constant 0 : i32
    %c0_i32_0 = arith.constant 0 : i32
    return %arg0, %c0_i32 : i32, i32
  }
  func.func @transform_1(%arg0: i32) -> (i32, i32) {
    %c0_i32 = arith.constant 0 : i32
    %c0_i32_0 = arith.constant 0 : i32
    %c0_i32_1 = arith.constant 0 : i32
    return %c0_i32, %c0_i32_0 : i32, i32
  }
  func.func @transform_2(%arg0: i32) -> (i32, i32) {
    %c0_i32 = arith.constant 0 : i32
    %c0_i32_0 = arith.constant 0 : i32
    %c0_i32_1 = arith.constant 0 : i32
    return %c0_i32, %c0_i32_0 : i32, i32
  }
  func.func @transform_3(%arg0: i32) -> (i32, i32) {
    %c0_i32 = arith.constant 0 : i32
    %c0_i32_0 = arith.constant 0 : i32
    return %arg0, %c0_i32 : i32, i32
  }
}

</mosaic_0001>

<bundles_post_ra>
// kernel: tpu_custom_call.1
= control target key start
LH: loop header
LB: loop body
LE: loop exit
PB: predicated region body
PF: predicated region fallthrough
CT: control target
= control target key end

     0   :  { %vm45_vm0 = vcmask 130048   ;;  %s213_s0 = inlined_call_operand.vmem [shape: bf16[32,16], index: 0, kind: input, shape index: {}]   ;;  %s214_s1 = inlined_call_operand.vmem [shape: bf16[16,128], index: 1, kind: input, shape index: {}]   ;;  %s215_s2 = inlined_call_operand.vmem [shape: f32[1,128], index: 2, kind: input, shape index: {}]   ;;  %s216_s3 = inlined_call_operand.hbm [shape: f32[32,128], index: 3, kind: output, shape index: {}]  }
   0x1   :  { %v139_v0 = vld [vmem:[%s214_s1] sm:$0xff]   ;;  %v141_v2 = vld [vmem:[%s213_s0 + $0x8] sm:$0xff]  }
   0x2   :  { %v140_v1 = vld [vmem:[%s213_s0] sm:$0xff]   ;;  %130 = vmatprep.subr.bf16.mxu0 %v139_v0 }
   0x3   :  { %131 = vmatpush3.bf16.msra.mxu0 %v139_v0  ;;  %132 = vmatprep.mubr.msk.bf16.mxu0 %vm45_vm0, %v140_v1 }
   0x4   :  { %8 = vsyncpa [#allocation3], 0  ;;  %v121_v3 = vld [vmem:[%s215_s2] ss:$0 sm:$0xff]  ;;  %s166_s1 = smov [#allocation2]  }
   0x5   :  { %s110_s20 = sshll.u32 %s166_s1, 4  ;;  %s111_s20 = int_to_ptr.vmem [resolvable:$true] %s110_s20 }
   0x6   :  { %133 = vmatmul.mubr.msk.bf16.vlgmr.msra.gmra.mrb[0].mxu0 %vm45_vm0, %v141_v2  ;;  %s142_s0 = scalar_lea.vmem %s111_s20, 512  ;;  %p147_p1 = scmp.lt.s32.totalorder %s111_s20, %s111_s20 }
   0x7   :  { %p143_p0 = scmp.ne.s32.totalorder %s111_s20, %s142_s0  ;;  %p148_p2 = scmp.lt.s32.totalorder %s142_s0, %s142_s0 }
   0x9   :  { %p149_p3 = por %p148_p2, %p147_p1 }
   0xb   :  { %p150_p4 = pnand %p149_p3, %p143_p0 }
  0xd9   :  { %v134_v4 = vpop.f32.mrb[0].mxu0 }
  0xda   :  { %v95_v5 = vadd.f32 %v134_v4, %v121_v3  ;;  %v86_v6 = vpop.f32.mrb[1].mxu0 }
  0xdb   :  { %v87_v7 = vadd.f32 %v121_v3, %v86_v6  ;;  %v135_v8 = vpop.f32.mrb[2].mxu0 }
  0xdc   :  { %103 = vst [vmem:[#allocation2 + $0x10] sm:$0xff] %v95_v5  ;;  %v98_v9 = vadd.f32 %v135_v8, %v121_v3  ;;  %v89_v10 = vpop.f32.mrb[3].mxu0 }
  0xdd   :  { %101 = vst [vmem:[#allocation2] sm:$0xff] %v87_v7  ;;  %v90_v11 = vadd.f32 %v121_v3, %v89_v10 }
  0xde   :  { %104 = vst [vmem:[#allocation2 + $0x18] sm:$0xff] %v98_v9 }
  0xdf   :  { %102 = vst [vmem:[#allocation2 + $0x8] sm:$0xff] %v90_v11 }
  0xe0   :  { %153 = shalt.err (!%p150_p4)
}
  0xe1   :  { %s154_s22 = scalar_lea.hbm %s216_s3, 512 }
  0xe2   :  { %p155_p5 = scmp.ne.s32.totalorder %s216_s3, %s154_s22  ;;  %p158_p6 = scmp.lt.u32.totalorder %s154_s22, %s216_s3 }
  0xe4   :  { %p160_p7 = pnand %p158_p6, %p155_p5 }
  0xe6   :  { %163 = shalt.err (!%p160_p7)
}
  0xe7   :  { %s167_s27 = smov 128   ;;  %s168_s28 = smov 8  }
  0xe8   :  { %116 = dma.vmem_to_hbm [thread:$0]  %s111_s20, 512, %s216_s3, [#allocation3], %s167_s27, %s167_s27, %s168_s28  }
  0xe9   :  { %164 = dma.done.wait [#allocation3], 512  }
  0xea   :  { %165 = vsyncadd [#allocation3], 4294966784 }
  0xeb   :  { %120 = vsyncpa [#allocation3], 1 }

</bundles_post_ra>
